<compile_context>
chip_gen: v7x
topology: tpu7x:2x2x1
jax: 0.10.0
libtpu: 0.0.40
codegen_flags: <defaults>
</compile_context>

<pallas_src>
import jax
import jax.numpy as jnp
from jax.experimental import pallas as pl
from jax.experimental.pallas import tpu as pltpu


def _round_up(v, m):
    return ((v + m - 1) // m) * m


def _cdiv(a, b):
    return -(-a // b)


def _vmem_chip_cap():
    """Physical per-TC VMEM minus ~20% headroom for Mosaic internal scratch."""
    cap = 128 * 1024 * 1024
    try:
        info = pltpu.get_tpu_info()
        cap = int(getattr(info, "vmem_capacity_bytes", cap))
    except Exception:
        pass
    return int(cap * 0.8)   # ~51 MiB on v7x (64 MiB), ~102 MiB on v5e/v6e (128 MiB)


def _choose_tile_m(n, d, itemsize, target_bytes=4 * 1024 * 1024):
    """D-aware batch tile: ~4 MiB of x per buffer, rebalanced so padding waste
    stays small and medium batches still give >= 2 grid steps (v7x megacore)."""
    d_lane = max(_round_up(d, 128), 128)                 # lane padding when D < 128
    tm = (target_bytes // (itemsize * d_lane)) // 128 * 128
    tm = int(min(max(tm, 128), 16 * 1024))
    steps = max(1, _cdiv(n, tm))
    if steps == 1 and n > 256:
        steps = 2                                        # give both v7x TCs work
    tm = max(128, _round_up(_cdiv(n, steps), 128))
    return tm


# ----------------------------------------------------------------------------
# Kernels
# ----------------------------------------------------------------------------
def _potential_kernel(x_ref, a_ref, b_ref, out_ref):
    """out[0, n] = x_n^T a x_n + b . x_n  (a already holds 0.5 * sum_k w_k A_k).

    x_ref   : (TM, D) VMEM (streamed tile of the batch, f32 or bf16)
    a_ref   : (D, D)  VMEM (resident effective quadratic form, 0.5 folded in)
    b_ref   : (1, D)  VMEM (resident effective linear term, f32)
    out_ref : (1, TM) VMEM (lane-dense row of potential values, f32)
    """
    x = x_ref[...]                                              # native dtype -> MXU
    a = a_ref[...]
    b = b_ref[...].astype(jnp.float32)                          # (1, D)
    y = jnp.dot(x, a, preferred_element_type=jnp.float32) + b   # (TM, D) f32
    # Upcast only for the elementwise product (v5e VPU has no bf16).
    row = jnp.sum(x.astype(jnp.float32) * y, axis=-1)           # (TM,)
    out_ref[...] = row[None, :].astype(out_ref.dtype)           # (1, TM)


def _potential_kernel_dtiled(x_full_ref, x_col_ref, a_ref, b_ref, out_ref):
    """Column-tiled variant for large D (A_eff not VMEM-resident).

    Grid = (n_tiles, d_tiles); the output block is revisited across the inner
    (reduction) axis and accumulated in place.

    x_full_ref : (TM, D)  full-feature x tile (resident across the inner axis)
    x_col_ref  : (TM, TD) column tile of the same x (for the elementwise product)
    a_ref      : (D, TD)  column tile of 0.5 * A_eff (streamed)
    b_ref      : (1, TD)  column tile of b_eff
    out_ref    : (1, TM)  accumulated potential values (f32)
    """
    @pl.when(pl.program_id(1) == 0)
    def _():
        out_ref[...] = jnp.zeros_like(out_ref)

    x = x_full_ref[...]
    a = a_ref[...]
    b = b_ref[...].astype(jnp.float32)
    y = jnp.dot(x, a, preferred_element_type=jnp.float32) + b   # (TM, TD)
    xc = x_col_ref[...].astype(jnp.float32)                     # (TM, TD)
    out_ref[...] += jnp.sum(xc * y, axis=-1)[None, :].astype(out_ref.dtype)


# ----------------------------------------------------------------------------
# pallas_call wrappers for the two paths
# ----------------------------------------------------------------------------
def _run_resident(x_p, a_eff, b_eff, *, tm, d, n_pad, vmem_limit, cost):
    grid = (n_pad // tm,)

    def build(resident_mode):
        if resident_mode is None:
            a_spec = pl.BlockSpec((d, d), lambda i: (0, 0))
            b_spec = pl.BlockSpec((1, d), lambda i: (0, 0))
        else:
            # Grid-invariant operands: single-buffer them (constant index_map).
            a_spec = pl.BlockSpec((d, d), lambda i: (0, 0), pipeline_mode=resident_mode)
            b_spec = pl.BlockSpec((1, d), lambda i: (0, 0), pipeline_mode=resident_mode)
        return pl.pallas_call(
            _potential_kernel,
            out_shape=jax.ShapeDtypeStruct((1, n_pad), jnp.float32),
            grid_spec=pltpu.PrefetchScalarGridSpec(
                num_scalar_prefetch=0,
                grid=grid,
                in_specs=[
                    pl.BlockSpec((tm, d), lambda i: (i, 0)),    # x tile (streamed)
                    a_spec,                                     # A_eff (resident)
                    b_spec,                                     # b_eff (resident)
                ],
                out_specs=pl.BlockSpec((1, tm), lambda i: (0, i)),  # lane-dense slab
            ),
            compiler_params=pltpu.CompilerParams(
                dimension_semantics=("parallel",),
                vmem_limit_bytes=vmem_limit,
            ),
            cost_estimate=cost,
        )

    try:
        return build(pl.Buffered(1))(x_p, a_eff, b_eff)
    except Exception:
        # pipeline_mode=Buffered(1) not supported on this jax build -> default buffering.
        return build(None)(x_p, a_eff, b_eff)


def _run_d_tiled(x_p, a_eff, b_eff, *, tm, td, d, n_pad, vmem_limit, cost):
    grid = (n_pad // tm, d // td)
    return pl.pallas_call(
        _potential_kernel_dtiled,
        out_shape=jax.ShapeDtypeStruct((1, n_pad), jnp.float32),
        grid_spec=pltpu.PrefetchScalarGridSpec(
            num_scalar_prefetch=0,
            grid=grid,
            in_specs=[
                pl.BlockSpec((tm, d), lambda i, j: (i, 0)),    # x, full features (held across j)
                pl.BlockSpec((tm, td), lambda i, j: (i, j)),   # x, column tile
                pl.BlockSpec((d, td), lambda i, j: (0, j)),    # 0.5*A_eff column tile (streamed)
                pl.BlockSpec((1, td), lambda i, j: (0, j)),    # b_eff column tile
            ],
            out_specs=pl.BlockSpec((1, tm), lambda i, j: (0, i)),
        ),
        compiler_params=pltpu.CompilerParams(
            dimension_semantics=("parallel", "arbitrary"),
            vmem_limit_bytes=vmem_limit,
        ),
        cost_estimate=cost,
    )(x_p, x_p, a_eff, b_eff)


# ----------------------------------------------------------------------------
# Public forward pass
# ----------------------------------------------------------------------------
def weighted_sum_potential_forward(x, a_stack, b_stack, weights, *, tile_m=None,
                                   force_d_tile=None):
    """Forward pass of the weighted sum of (scaled) quadratic potentials.

    x        : (N, D)        float32 or bfloat16 batch of points
    a_stack  : (K, D, D)     symmetric quadratic forms A_k
    b_stack  : (K, D) or (K, 1, D) linear terms b_k
    weights  : length-K sequence of non-negative effective weights
               (WeightedSumPotential weights with ScaledPotential scales folded in)
    returns  : (N, 1) float32 potential values
    """
    n, d = x.shape
    k = a_stack.shape[0]

    # --- Collapse the weighted sum (exact up to fp reassociation). ----------
    w = jnp.asarray(weights, dtype=jnp.float32)
    a_eff = 0.5 * jnp.tensordot(w, a_stack.astype(jnp.float32), axes=([0], [0]))      # (D, D)
    b_eff = jnp.tensordot(w, b_stack.reshape(k, d).astype(jnp.float32),
                          axes=([0], [0]))[None, :]                                   # (1, D) f32

    # bf16 fast path: feed the MXU native bf16 (halves HBM traffic of x, and
    # halves the VMEM footprint of both x tiles and resident A).
    if x.dtype == jnp.bfloat16:
        a_eff = a_eff.astype(jnp.bfloat16)

    x_item = jnp.dtype(x.dtype).itemsize
    a_item = jnp.dtype(a_eff.dtype).itemsize
    d_lane = max(_round_up(d, 128), 128)
    d_sub = max(_round_up(d, 8), 8)
    chip_cap = _vmem_chip_cap()

    # --- Choose path: resident A_eff vs column-tiled A_eff (large D). -------
    a_resident_bytes = d_sub * d_lane * a_item
    td = None
    if force_d_tile is not None:
        td = int(force_d_tile)
        assert td % 128 == 0 and d % td == 0
    elif a_resident_bytes > chip_cap // 2 and d % 128 == 0:
        for cand in (512, 256, 128):
            if d % cand == 0:
                td = cand
                break

    # --- Batch tiling (no divisibility requirement on N). -------------------
    if tile_m is None:
        tm = _choose_tile_m(n, d, x_item)
    else:
        assert tile_m > 0 and tile_m % 128 == 0
        tm = min(tile_m, _round_up(n, 128))
    n_pad = _round_up(n, tm)
    x_p = x if n_pad == n else jnp.pad(x, ((0, n_pad - n), (0, 0)))

    # --- Scheduler hint for XLA around the kernel. ---------------------------
    cost = pl.CostEstimate(
        flops=int(2 * n * d * d + 2 * n * d),
        transcendentals=0,
        bytes_accessed=int(n * d * x_item + d * d * a_item + d * 4 + n * 4),
    )

    # --- VMEM request = actual byte count of the chosen buffering + headroom.
    out_bytes = 2 * 8 * tm * 4
    if td is None:
        x_bytes = 2 * tm * d_lane * x_item              # double-buffered streamed x
        a_bytes = 2 * a_resident_bytes                  # conservative (covers fallback)
        b_bytes = 2 * 8 * d_lane * 4
        est = x_bytes + a_bytes + b_bytes + out_bytes
        vmem_limit = min(max(int(est * 1.25) + (1 << 20), 16 * 1024 * 1024), chip_cap)
        out_row = _run_resident(x_p, a_eff, b_eff, tm=tm, d=d, n_pad=n_pad,
                                vmem_limit=vmem_limit, cost=cost)
    else:
        x_bytes = 2 * tm * d_lane * x_item + 2 * tm * td * x_item
        a_bytes = 2 * d_sub * td * a_item
        b_bytes = 2 * 8 * td * 4
        est = x_bytes + a_bytes + b_bytes + out_bytes
        vmem_limit = min(max(int(est * 1.25) + (1 << 20), 16 * 1024 * 1024), chip_cap)
        out_row = _run_d_tiled(x_p, a_eff, b_eff, tm=tm, td=td, d=d, n_pad=n_pad,
                               vmem_limit=vmem_limit, cost=cost)

    return out_row.reshape(n_pad, 1)[:n].astype(jnp.float32)


def reference_forward(x, a_stack, b_stack, weights):
    """Pure-JAX reference mirroring the PyTorch per-potential composition."""
    x = x.astype(jnp.float32)
    out = 0.0
    for idx in range(a_stack.shape[0]):
        a = a_stack[idx].astype(jnp.float32)
        b = b_stack.reshape(a_stack.shape[0], -1)[idx].astype(jnp.float32)
        quad = 0.5 * jnp.sum(x * (x @ a), axis=-1, keepdims=True)
        lin = (x @ b)[:, None]
        out = out + weights[idx] * (quad + lin)
    return out


if __name__ == "__main__":
    key = jax.random.PRNGKey(0)

    def make_case(n, d, k, dtype, kk):
        kx, ka, kb = jax.random.split(kk, 3)
        x = jax.random.normal(kx, (n, d), dtype=jnp.float32).astype(dtype)
        a_raw = jax.random.normal(ka, (k, d, d), dtype=jnp.float32) * 0.1
        a_stack = 0.5 * (a_raw + jnp.swapaxes(a_raw, -1, -2))
        a_stack = a_stack + jnp.eye(d, dtype=jnp.float32)[None]
        b_stack = jax.random.normal(kb, (k, d), dtype=jnp.float32) * 0.1
        return x, a_stack, b_stack

    # Composition exactly as in the module:
    #   WeightedSumPotential([ScaledPotential(u0, scale=2.0), u1], weights=[1.0, 3.0])
    # => effective per-potential weights (1.0 * 2.0, 3.0)
    scale = 2.0
    ws_weights = (1.0, 3.0)
    effective_weights = (ws_weights[0] * scale, ws_weights[1])

    k1, k2, k3 = jax.random.split(key, 3)

    # 1) Small f32 case (resident-A fast path).
    x, a_s, b_s = make_case(8, 32, 2, jnp.float32, k1)
    out = jax.block_until_ready(
        weighted_sum_potential_forward(x, a_s, b_s, effective_weights))
    ref = reference_forward(x, a_s, b_s, effective_weights)
    assert out.shape == (8, 1)
    assert jnp.allclose(out, ref, atol=1e-4, rtol=1e-4), (out, ref)

    # 2) D-tiled reduction path (forced), non-multiple batch -> padding + 2 steps.
    x, a_s, b_s = make_case(300, 256, 2, jnp.float32, k2)
    out = jax.block_until_ready(
        weighted_sum_potential_forward(x, a_s, b_s, effective_weights,
                                       force_d_tile=128))
    ref = reference_forward(x, a_s, b_s, effective_weights)
    assert out.shape == (300, 1)
    assert jnp.allclose(out, ref, atol=1e-3, rtol=1e-4), (out, ref)

    # 3) bf16 fast path (native bf16 MXU feed; loose tolerance for bf16 A_eff).
    x, a_s, b_s = make_case(64, 128, 2, jnp.bfloat16, k3)
    out = jax.block_until_ready(
        weighted_sum_potential_forward(x, a_s, b_s, effective_weights))
    ref = reference_forward(x, a_s, b_s, effective_weights)
    assert out.shape == (64, 1)
    assert jnp.allclose(out, ref, atol=0.5, rtol=2e-2), (out, ref)

    print("KERNEL_OK")
</pallas_src>

<mosaic_0001>
module attributes {stable_mosaic.version = 11 : i64} {
  func.func @_potential_kernel(%arg0: i32, %arg1: memref<128x32xf32, #tpu.memory_space<vmem>>, %arg2: memref<32x32xf32, #tpu.memory_space<vmem>>, %arg3: memref<1x32xf32, #tpu.memory_space<vmem>>, %arg4: memref<1x128xf32, #tpu.memory_space<vmem>>) attributes {dimension_semantics = [#tpu.dimension_semantics<parallel>], iteration_bounds = array<i64: 1>, scalar_prefetch = 0 : i64, scratch_operands = 0 : i64, tpu.core_type = #tpu.core_type<tc>, window_params = [{transform_indices = @transform_0, window_bounds = array<i64: 128, 32>}, {pipeline_mode = #tpu.pipeline_mode<synchronous>, transform_indices = @transform_1, window_bounds = array<i64: 32, 32>}, {pipeline_mode = #tpu.pipeline_mode<synchronous>, transform_indices = @transform_2, window_bounds = array<i64: 1, 32>}, {transform_indices = @transform_3, window_bounds = array<i64: 1, 128>}]} {
    %c0 = arith.constant 0 : index
    %c0_0 = arith.constant 0 : index
    %0 = vector.load %arg1[%c0, %c0_0] : memref<128x32xf32, #tpu.memory_space<vmem>>, vector<128x32xf32>
    %c0_1 = arith.constant 0 : index
    %c0_2 = arith.constant 0 : index
    %1 = vector.load %arg2[%c0_1, %c0_2] : memref<32x32xf32, #tpu.memory_space<vmem>>, vector<32x32xf32>
    %c0_3 = arith.constant 0 : index
    %c0_4 = arith.constant 0 : index
    %2 = vector.load %arg3[%c0_3, %c0_4] : memref<1x32xf32, #tpu.memory_space<vmem>>, vector<1x32xf32>
    %cst = arith.constant dense<0.000000e+00> : vector<128x32xf32>
    %3 = tpu.matmul %0, %1, %cst {dimension_numbers = #tpu.dot_dimension_numbers<[1], [0], [0], [1], [0, 0, 1, 1], [], []>} : vector<128x32xf32>, vector<32x32xf32>, vector<128x32xf32> -> vector<128x32xf32>
    %4 = vector.broadcast %2 : vector<1x32xf32> to vector<128x32xf32>
    %5 = arith.addf %3, %4 : vector<128x32xf32>
    %6 = arith.mulf %0, %5 : vector<128x32xf32>
    %cst_5 = arith.constant dense<0.000000e+00> : vector<128xf32>
    %7 = vector.multi_reduction <add>, %6, %cst_5 [1] : vector<128x32xf32> to vector<128xf32>
    %8 = vector.shape_cast %7 : vector<128xf32> to vector<1x128xf32>
    %c0_6 = arith.constant 0 : index
    %c0_7 = arith.constant 0 : index
    %9 = vector.load %arg4[%c0_6, %c0_7] : memref<1x128xf32, #tpu.memory_space<vmem>>, vector<1x128xf32>
    tpu.vector_store %arg4[%c0_6, %c0_7], %8 {strides = array<i32>} : memref<1x128xf32, #tpu.memory_space<vmem>>, vector<1x128xf32>,
    return
  }
  func.func @transform_0(%arg0: i32) -> (i32, i32) {
    %c0_i32 = arith.constant 0 : i32
    %c0_i32_0 = arith.constant 0 : i32
    return %arg0, %c0_i32 : i32, i32
  }
  func.func @transform_1(%arg0: i32) -> (i32, i32) {
    %c0_i32 = arith.constant 0 : i32
    %c0_i32_0 = arith.constant 0 : i32
    %c0_i32_1 = arith.constant 0 : i32
    return %c0_i32, %c0_i32_0 : i32, i32
  }
  func.func @transform_2(%arg0: i32) -> (i32, i32) {
    %c0_i32 = arith.constant 0 : i32
    %c0_i32_0 = arith.constant 0 : i32
    %c0_i32_1 = arith.constant 0 : i32
    return %c0_i32, %c0_i32_0 : i32, i32
  }
  func.func @transform_3(%arg0: i32) -> (i32, i32) {
    %c0_i32 = arith.constant 0 : i32
    %c0_i32_0 = arith.constant 0 : i32
    return %c0_i32, %arg0 : i32, i32
  }
}

module attributes {stable_mosaic.version = 11 : i64} {
  func.func @_potential_kernel(%arg0: i32, %arg1: memref<128x32xf32, #tpu.memory_space<vmem>>, %arg2: memref<32x32xf32, #tpu.memory_space<vmem>>, %arg3: memref<1x32xf32, #tpu.memory_space<vmem>>, %arg4: memref<1x128xf32, #tpu.memory_space<vmem>>) attributes {dimension_semantics = [#tpu.dimension_semantics<parallel>], iteration_bounds = array<i64: 1>, scalar_prefetch = 0 : i64, scratch_operands = 0 : i64, tpu.core_type = #tpu.core_type<tc>, window_params = [{transform_indices = @transform_0, window_bounds = array<i64: 128, 32>}, {pipeline_mode = #tpu.pipeline_mode<synchronous>, transform_indices = @transform_1, window_bounds = array<i64: 32, 32>}, {pipeline_mode = #tpu.pipeline_mode<synchronous>, transform_indices = @transform_2, window_bounds = array<i64: 1, 32>}, {transform_indices = @transform_3, window_bounds = array<i64: 1, 128>}]} {
    %c0 = arith.constant 0 : index
    %c0_0 = arith.constant 0 : index
    %0 = vector.load %arg1[%c0, %c0_0] : memref<128x32xf32, #tpu.memory_space<vmem>>, vector<128x32xf32>
    %c0_1 = arith.constant 0 : index
    %c0_2 = arith.constant 0 : index
    %1 = vector.load %arg2[%c0_1, %c0_2] : memref<32x32xf32, #tpu.memory_space<vmem>>, vector<32x32xf32>
    %c0_3 = arith.constant 0 : index
    %c0_4 = arith.constant 0 : index
    %2 = vector.load %arg3[%c0_3, %c0_4] : memref<1x32xf32, #tpu.memory_space<vmem>>, vector<1x32xf32>
    %cst = arith.constant dense<0.000000e+00> : vector<128x32xf32>
    %3 = tpu.matmul %0, %1, %cst {dimension_numbers = #tpu.dot_dimension_numbers<[1], [0], [0], [1], [0, 0, 1, 1], [], []>} : vector<128x32xf32>, vector<32x32xf32>, vector<128x32xf32> -> vector<128x32xf32>
    %4 = vector.broadcast %2 : vector<1x32xf32> to vector<128x32xf32>
    %5 = arith.addf %3, %4 : vector<128x32xf32>
    %6 = arith.mulf %0, %5 : vector<128x32xf32>
    %cst_5 = arith.constant dense<0.000000e+00> : vector<128xf32>
    %7 = vector.multi_reduction <add>, %6, %cst_5 [1] : vector<128x32xf32> to vector<128xf32>
    %8 = vector.shape_cast %7 : vector<128xf32> to vector<1x128xf32>
    %c0_6 = arith.constant 0 : index
    %c0_7 = arith.constant 0 : index
    %9 = vector.load %arg4[%c0_6, %c0_7] : memref<1x128xf32, #tpu.memory_space<vmem>>, vector<1x128xf32>
    tpu.vector_store %arg4[%c0_6, %c0_7], %8 {strides = array<i32>} : memref<1x128xf32, #tpu.memory_space<vmem>>, vector<1x128xf32>,
    return
  }
  func.func @transform_0(%arg0: i32) -> (i32, i32) {
    %c0_i32 = arith.constant 0 : i32
    %c0_i32_0 = arith.constant 0 : i32
    return %arg0, %c0_i32 : i32, i32
  }
  func.func @transform_1(%arg0: i32) -> (i32, i32) {
    %c0_i32 = arith.constant 0 : i32
    %c0_i32_0 = arith.constant 0 : i32
    %c0_i32_1 = arith.constant 0 : i32
    return %c0_i32, %c0_i32_0 : i32, i32
  }
  func.func @transform_2(%arg0: i32) -> (i32, i32) {
    %c0_i32 = arith.constant 0 : i32
    %c0_i32_0 = arith.constant 0 : i32
    %c0_i32_1 = arith.constant 0 : i32
    return %c0_i32, %c0_i32_0 : i32, i32
  }
  func.func @transform_3(%arg0: i32) -> (i32, i32) {
    %c0_i32 = arith.constant 0 : i32
    %c0_i32_0 = arith.constant 0 : i32
    return %c0_i32, %arg0 : i32, i32
  }
}

</mosaic_0001>

<bundles_post_ra>
// kernel: tpu_custom_call.1
= control target key start
LH: loop header
LB: loop body
LE: loop exit
PB: predicated region body
PF: predicated region fallthrough
CT: control target
= control target key end

     0   :  { %vm42_vm0 = vcmask 261120   ;;  %s759_s0 = inlined_call_operand.vmem [shape: f32[128,32], index: 0, kind: input, shape index: {}]   ;;  %s760_s1 = inlined_call_operand.vmem [shape: f32[32,32], index: 1, kind: input, shape index: {}]   ;;  %s761_s2 = inlined_call_operand.vmem [shape: f32[1,32], index: 2, kind: input, shape index: {}]   ;;  %s762_s3 = inlined_call_operand.hbm [shape: f32[1,128], index: 3, kind: output, shape index: {}]  }
   0x1   :  { %v31_v0 = vld [vmem:[%s760_s1] sm:$0xff]  ;;  %v32_v1 = vld [vmem:[%s760_s1 + $0x8] sm:$0xff]  ;;  %v33_v2 = vld [vmem:[%s760_s1 + $0x10] sm:$0xff] }
   0x2   :  { %v512_v3 = vpack.c.bf16 %v32_v1, %v31_v0  ;;  %v34_v4 = vld [vmem:[%s760_s1 + $0x18] sm:$0xff]  ;;  %v15_v5 = vld [vmem:[%s759_s0] sm:$0xff] }
   0x3   :  { %v588_v6 = vld [vmem:[%s759_s0 + $0x40] sm:$0xff]  ;;  %v516_v7 = vpack.c.bf16 %v34_v4, %v33_v2  ;;  %488 = vmatprep.mubr.msk.f32.mxu0 %vm42_vm0, %v15_v5 }
   0x4   :  { %500 = vmatprep.mubr.msk.f32.mxu1 %vm42_vm0, %v588_v6  ;;  %513 = vmatprep.subr.bf16.mxu0 %v512_v3 }
   0x5   :  { %520 = vmatprep.subr.bf16.mxu1 %v512_v3  ;;  %515 = vmatpush3.bf16.msra.mxu0 %v512_v3 }
   0x6   :  { %522 = vmatpush3.bf16.msra.mxu1 %v512_v3  ;;  %517 = vmatprep.subr.bf16.mxu0 %v516_v7 }
   0x7   :  { %521 = vmatprep.subr.bf16.mxu1 %v516_v7 }
   0x8   :  { %8 = vsyncpa [#allocation3], 0  ;;  %v16_v8 = vld [vmem:[%s759_s0 + $0x8] sm:$0xff]  ;;  %v602_v10 = vld [vmem:[%s759_s0 + $0x10] sm:$0xff]  ;;  %vm327_vm1 = vcmask 130112   ;;  %vm334_vm2 = vcmask 195712  }
   0x9   :  { %519 = vmatpush3.bf16.msra.mxu0 %v516_v7  ;;  %v24_v9 = vld [vmem:[%s759_s0 + $0x48] sm:$0xff]  ;;  %v607_v11 = vld [vmem:[%s759_s0 + $0x50] sm:$0xff]  ;;  %v18_v12 = vld [vmem:[%s759_s0 + $0x18] sm:$0xff]  ;;  %vm341_vm3 = vcmask 261312   ;;  %vm348_vm4 = vcmask 326912   ;;  %vm355_vm5 = vcmask 392512  }
   0xa   :  { %523 = vmatpush3.bf16.msra.mxu1 %v516_v7  ;;  %v26_v13 = vld [vmem:[%s759_s0 + $0x58] sm:$0xff]  ;;  %v624_v14 = vld [vmem:[%s759_s0 + $0x20] sm:$0xff]  ;;  %v20_v16 = vld [vmem:[%s759_s0 + $0x28] sm:$0xff]  ;;  %vm362_vm6 = vcmask 458112   ;;  %vm369_vm7 = vcmask 523712   ;;  %vm376_vm8 = vcmask 589312  }
   0xb   :  { %v629_v15 = vld [vmem:[%s759_s0 + $0x60] sm:$0xff]  ;;  %v643_v17 = vld [vmem:[%s759_s0 + $0x68] sm:$0xff]  ;;  %v648_v18 = vld [vmem:[%s759_s0 + $0x30] sm:$0xff]  ;;  %vm383_vm9 = vcmask 654912   ;;  %vm390_vm10 = vcmask 720512   ;;  %vm397_vm11 = vcmask 786112  }
   0xc   :  { %489 = vmatmul.mubr.msk.f32.vlgmr.msra.gmra.mrb[0].mxu0 %vm42_vm0, %v16_v8  ;;  %v653_v19 = vld [vmem:[%s759_s0 + $0x70] sm:$0xff]  ;;  %v663_v20 = vld [vmem:[%s759_s0 + $0x38] sm:$0xff]  ;;  %v679_v22 = vld [vmem:[%s761_s2] ss:$0 sm:$0xff]  ;;  %vm404_vm12 = vcmask 851712   ;;  %vm411_vm13 = vcmask 917312  }
   0xd   :  { %501 = vmatmul.mubr.msk.f32.vlgmr.msra.gmra.mrb[0].mxu1 %vm42_vm0, %v24_v9  ;;  %491 = vmatprep.mubr.msk.f32.mxu0 %vm42_vm0, %v602_v10  ;;  %v670_v21 = vld [vmem:[%s759_s0 + $0x78] sm:$0xff]  ;;  %vm418_vm14 = vcmask 982912   ;;  %s549_s0 = smov [#allocation2]   ;;  %vm425_vm15 = vcmask 1048512  }
   0xe   :  { %503 = vmatprep.mubr.msk.f32.mxu1 %vm42_vm0, %v607_v11  ;;  %s435_s2 = sshll.u32 %s549_s0, 4  ;;  %s436_s2 = int_to_ptr.vmem [resolvable:$true] %s435_s2 }
   0xf   :  { %s525_s25 = scalar_lea.vmem %s436_s2, 16  ;;  %s529_s26 = scalar_lea.vmem %s436_s2, 32 }
  0x10   :  { %492 = vmatmul.mubr.msk.f32.gmra.mrb[2].mxu0 %vm42_vm0, %v18_v12  ;;  %p526_p0 = scmp.ne.s32.totalorder %s436_s2, %s525_s25  ;;  %p530_p1 = scmp.lt.s32.totalorder %s436_s2, %s436_s2 }
  0x11   :  { %504 = vmatmul.mubr.msk.f32.gmra.mrb[2].mxu1 %vm42_vm0, %v26_v13  ;;  %494 = vmatprep.mubr.msk.f32.mxu0 %vm42_vm0, %v624_v14  ;;  %p531_p2 = scmp.lt.s32.totalorder %s529_s26, %s525_s25 }
  0x12   :  { %506 = vmatprep.mubr.msk.f32.mxu1 %vm42_vm0, %v629_v15 }
  0x13   :  { %p532_p3 = por %p531_p2, %p530_p1 }
  0x14   :  { %495 = vmatmul.mubr.msk.f32.gmra.mrb[4].mxu0 %vm42_vm0, %v20_v16 }
  0x15   :  { %507 = vmatmul.mubr.msk.f32.gmra.mrb[4].mxu1 %vm42_vm0, %v643_v17  ;;  %497 = vmatprep.mubr.msk.f32.mxu0 %vm42_vm0, %v648_v18  ;;  %p533_p4 = pnand %p532_p3, %p526_p0 }
  0x16   :  { %509 = vmatprep.mubr.msk.f32.mxu1 %vm42_vm0, %v653_v19 }
  0x18   :  { %498 = vmatmul.mubr.msk.f32.gmra.mrb[6].mxu0 %vm42_vm0, %v663_v20 }
  0x19   :  { %510 = vmatmul.mubr.msk.f32.gmra.mrb[6].mxu1 %vm42_vm0, %v670_v21 }
  0xdf   :  { %v490_v23 = vpop.f32.mrb[0].mxu0 }
  0xe0   :  { %v502_v24 = vpop.f32.mrb[0].mxu1  ;;  %v163_v25 = vadd.f32 %v490_v23, %v679_v22  ;;  %v157_v27 = vpop.f32.mrb[1].mxu0 }
  0xe1   :  { %v203_v26 = vadd.f32 %v502_v24, %v679_v22  ;;  %v197_v28 = vpop.f32.mrb[1].mxu1  ;;  %v158_v29 = vadd.f32 %v679_v22, %v157_v27 }
  0xe2   :  { %v237_v31 = vmul.f32 %v163_v25, %v16_v8  ;;  %v198_v32 = vadd.f32 %v679_v22, %v197_v28 }
  0xe3   :  { %v245_v30 = vmul.f32 %v203_v26, %v24_v9  ;;  %v493_v33 = vpop.f32.mrb[2].mxu0  ;;  %v236_v35 = vmul.f32 %v158_v29, %v15_v5  ;;  %v316_v26 = vlaneseq }
  0xe4   :  { %v505_v34 = vpop.f32.mrb[2].mxu1  ;;  %v173_v36 = vadd.f32 %v493_v33, %v679_v22  ;;  %v167_v37 = vpop.f32.mrb[3].mxu0  ;;  %v255_v39 = vsel %vm42_vm0, %v237_v31, 0.0  ;;  %v244_v45 = vmul.f32 %v198_v32, %v588_v6 }
  0xe5   :  { %v279_v38 = vsel %vm42_vm0, %v245_v30, 0.0  ;;  %v213_v40 = vadd.f32 %v505_v34, %v679_v22  ;;  %v207_v41 = vpop.f32.mrb[3].mxu1  ;;  %256 = vadd.xlane.f32.xlu0 %v255_v39  ;;  %v168_v47 = vadd.f32 %v679_v22, %v167_v37  ;;  %v252_v50 = vsel %vm42_vm0, %v236_v35, 0.0 }
  0xe6   :  { %280 = vadd.xlane.f32.xlu1 %v279_v38  ;;  %v239_v42 = vmul.f32 %v173_v36, %v18_v12  ;;  %v208_v48 = vadd.f32 %v679_v22, %v207_v41  ;;  %v276_v58 = vsel %vm42_vm0, %v244_v45, 0.0  ;;  %v725_v29 = vshrl.u32 %v316_v26, 7 }
  0xe7   :  { %v247_v43 = vmul.f32 %v213_v40, %v26_v13  ;;  %v496_v44 = vpop.f32.mrb[4].mxu0  ;;  %v238_v59 = vmul.f32 %v168_v47, %v602_v10 }
  0xe8   :  { %v508_v46 = vpop.f32.mrb[4].mxu1  ;;  %v261_v49 = vsel %vm42_vm0, %v239_v42, 0.0  ;;  %v177_v51 = vpop.f32.mrb[5].mxu0  ;;  %v183_v54 = vadd.f32 %v496_v44, %v679_v22  ;;  %v246_v60 = vmul.f32 %v208_v48, %v607_v11 }
  0xe9   :  { %v217_v52 = vpop.f32.mrb[5].mxu1  ;;  %253 = vadd.xlane.f32.xlu0 %v252_v50  ;;  %v285_v53 = vsel %vm42_vm0, %v247_v43, 0.0  ;;  %v178_v55 = vadd.f32 %v679_v22, %v177_v51  ;;  %v258_v3 = vsel %vm42_vm0, %v238_v59, 0.0  ;;  %v223_v5 = vadd.f32 %v508_v46, %v679_v22 }
  0xea   :  { %262 = vadd.xlane.f32.xlu1 %v261_v49  ;;  %v241_v1 = vmul.f32 %v183_v54, %v20_v16  ;;  %v282_v4 = vsel %vm42_vm0, %v246_v60, 0.0  ;;  %v218_v6 = vadd.f32 %v679_v22, %v217_v52 }
  0xeb   :  { %v499_v56 = vpop.f32.mrb[6].mxu0  ;;  %v240_v2 = vmul.f32 %v178_v55, %v624_v14  ;;  %v249_v11 = vmul.f32 %v223_v5, %v643_v17 }
  0xec   :  { %v511_v57 = vpop.f32.mrb[6].mxu1  ;;  %v187_v61 = vpop.f32.mrb[7].mxu0  ;;  %v193_v63 = vadd.f32 %v499_v56, %v679_v22  ;;  %v267_v7 = vsel %vm42_vm0, %v241_v1, 0.0  ;;  %v248_v12 = vmul.f32 %v218_v6, %v629_v15 }
  0xed   :  { %v227_v62 = vpop.f32.mrb[7].mxu1  ;;  %277 = vadd.xlane.f32.xlu0 %v276_v58  ;;  %v188_v0 = vadd.f32 %v679_v22, %v187_v61  ;;  %v264_v8 = vsel %vm42_vm0, %v240_v2, 0.0  ;;  %v233_v13 = vadd.f32 %v511_v57, %v679_v22 }
  0xee   :  { %286 = vadd.xlane.f32.xlu1 %v285_v53  ;;  %v243_v9 = vmul.f32 %v193_v63, %v663_v20  ;;  %v228_v23 = vadd.f32 %v679_v22, %v227_v62  ;;  %v291_v20 = vsel %vm42_vm0, %v249_v11, 0.0  ;;  %v317_v22 = vand.u32 127, %v316_v26 }
  0xef   :  { %v242_v10 = vmul.f32 %v188_v0, %v648_v18  ;;  %v288_v18 = vsel %vm42_vm0, %v248_v12, 0.0  ;;  %v251_v24 = vmul.f32 %v233_v13, %v670_v21 }
  0xf0   :  { %v273_v14 = vsel %vm42_vm0, %v243_v9, 0.0  ;;  %v250_v17 = vmul.f32 %v228_v23, %v653_v19  ;;  %v322_v30 = vadd.s32 4294967288, %v317_v22  ;;  %v329_v32 = vadd.s32 4294967280, %v317_v22 }
  0xf1   :  { %283 = vadd.xlane.f32.xlu0 %v282_v4  ;;  %v270_v16 = vsel %vm42_vm0, %v242_v10, 0.0  ;;  %v297_v15 = vsel %vm42_vm0, %v251_v24, 0.0  ;;  %v320_v19 = vsub.s32 %v317_v22, %v725_v29  ;;  %v336_v34 = vadd.s32 4294967272, %v317_v22 }
  0xf2   :  { %259 = vadd.xlane.f32.xlu1 %v258_v3  ;;  %v294_v25 = vsel %vm42_vm0, %v250_v17, 0.0  ;;  %v325_v33 = vsub.s32 %v322_v30, %v725_v29  ;;  %v332_v37 = vsub.s32 %v329_v32, %v725_v29  ;;  %v343_v38 = vadd.s32 4294967264, %v317_v22 }
  0xf3   :  { %v350_v40 = vadd.s32 4294967256, %v317_v22  ;;  %v339_v42 = vsub.s32 %v336_v34, %v725_v29  ;;  %v364_v47 = vadd.s32 4294967240, %v317_v22  ;;  %v357_v48 = vadd.s32 4294967248, %v317_v22 }
  0xf4   :  { %v346_v46 = vsub.s32 %v343_v38, %v725_v29  ;;  %v371_v51 = vadd.s32 4294967232, %v317_v22  ;;  %v378_v53 = vadd.s32 4294967224, %v317_v22  ;;  %v385_v55 = vadd.s32 4294967216, %v317_v22 }
  0xf5   :  { %265 = vadd.xlane.f32.xlu0 %v264_v8  ;;  %v353_v50 = vsub.s32 %v350_v40, %v725_v29  ;;  %v367_v59 = vsub.s32 %v364_v47, %v725_v29  ;;  %v360_v60 = vsub.s32 %v357_v48, %v725_v29  ;;  %v392_v61 = vadd.s32 4294967208, %v317_v22 }
  0xf6   :  { %268 = vadd.xlane.f32.xlu1 %v267_v7  ;;  %v406_v0 = vadd.s32 4294967192, %v317_v22  ;;  %v374_v1 = vsub.s32 %v371_v51, %v725_v29  ;;  %v399_v3 = vadd.s32 4294967200, %v317_v22  ;;  %v381_v4 = vsub.s32 %v378_v53, %v725_v29 }
  0xf7   :  { %v388_v5 = vsub.s32 %v385_v55, %v725_v29  ;;  %v420_v10 = vadd.s32 4294967176, %v317_v22  ;;  %v413_v11 = vadd.s32 4294967184, %v317_v22  ;;  %v395_v12 = vsub.s32 %v392_v61, %v725_v29 }
  0xf9   :  { %271 = vadd.xlane.f32.xlu0 %v270_v16  ;;  %v423_v22 = vsub.s32 %v420_v10, %v725_v29 }
  0xfa   :  { %274 = vadd.xlane.f32.xlu1 %v273_v14  ;;  %v409_v14 = vsub.s32 %v406_v0, %v725_v29 }
  0xfd   :  { %289 = vadd.xlane.f32.xlu0 %v288_v18 }
  0xfe   :  { %292 = vadd.xlane.f32.xlu1 %v291_v20  ;;  %v402_v20 = vsub.s32 %v399_v3, %v725_v29 }
 0x101   :  { %295 = vadd.xlane.f32.xlu0 %v294_v25 }
 0x102   :  { %298 = vadd.xlane.f32.xlu1 %v297_v15 }
 0x172   :  { %v257_v28 = vpop.xlane.xlu0 %256 }
 0x173   :  { %v723_v27 = vpop.xlane.xlu1 %280  ;;  %v326_v41 = vrot.slane %v257_v28, %v325_v33  ;;  %v416_v28 = vsub.s32 %v413_v11, %v725_v29 }
 0x174   :  { %v382_v18 = vrot.slane %v723_v27, %v381_v4 }
 0x176   :  { %v254_v21 = vpop.xlane.xlu0 %253 }
 0x177   :  { %v263_v31 = vpop.xlane.xlu1 %262  ;;  %v321_v39 = vrot.slane %v254_v21, %v320_v19 }
 0x178   :  { %v340_v54 = vrot.slane %v263_v31, %v339_v42 }
 0x179   :  { %v328_v49 = vsel %vm327_vm1, %v326_v41, %v321_v39 }
 0x17a   :  { %v278_v36 = vpop.xlane.xlu0 %277 }
 0x17b   :  { %v729_v35 = vpop.xlane.xlu1 %286  ;;  %v375_v16 = vrot.slane %v278_v36, %v374_v1 }
 0x17c   :  { %v396_v30 = vrot.slane %v729_v35, %v395_v12 }
 0x17e   :  { %v284_v44 = vpop.xlane.xlu0 %283 }
 0x17f   :  { %v260_v43 = vpop.xlane.xlu1 %259  ;;  %v389_v25 = vrot.slane %v284_v44, %v388_v5 }
 0x180   :  { %v333_v45 = vrot.slane %v260_v43, %v332_v37 }
 0x182   :  { %v335_v52 = vsel %vm334_vm2, %v333_v45, %v328_v49  ;;  %v266_v57 = vpop.xlane.xlu0 %265 }
 0x183   :  { %v269_v56 = vpop.xlane.xlu1 %268  ;;  %v347_v58 = vrot.slane %v266_v57, %v346_v46  ;;  %v342_v63 = vsel %vm341_vm3, %v340_v54, %v335_v52 }
 0x184   :  { %v354_v62 = vrot.slane %v269_v56, %v353_v50 }
 0x185   :  { %v349_v2 = vsel %vm348_vm4, %v347_v58, %v342_v63 }
 0x186   :  { %v272_v7 = vpop.xlane.xlu0 %271  ;;  %v356_v13 = vsel %vm355_vm5, %v354_v62, %v349_v2 }
 0x187   :  { %v275_v6 = vpop.xlane.xlu1 %274  ;;  %v361_v9 = vrot.slane %v272_v7, %v360_v60 }
 0x188   :  { %v368_v8 = vrot.slane %v275_v6, %v367_v59 }
 0x189   :  { %v363_v23 = vsel %vm362_vm6, %v361_v9, %v356_v13 }
 0x18a   :  { %v370_v24 = vsel %vm369_vm7, %v368_v8, %v363_v23  ;;  %v290_v15 = vpop.xlane.xlu0 %289 }
 0x18b   :  { %v293_v17 = vpop.xlane.xlu1 %292  ;;  %v377_v26 = vsel %vm376_vm8, %v375_v16, %v370_v24  ;;  %v403_v32 = vrot.slane %v290_v15, %v402_v20 }
 0x18c   :  { %v384_v31 = vsel %vm383_vm9, %v382_v18, %v377_v26  ;;  %v410_v19 = vrot.slane %v293_v17, %v409_v14 }
 0x18d   :  { %v391_v21 = vsel %vm390_vm10, %v389_v25, %v384_v31 }
 0x18e   :  { %v398_v27 = vsel %vm397_vm11, %v396_v30, %v391_v21  ;;  %v296_v34 = vpop.xlane.xlu0 %295 }
 0x18f   :  { %v299_v33 = vpop.xlane.xlu1 %298  ;;  %v405_v36 = vsel %vm404_vm12, %v403_v32, %v398_v27  ;;  %v417_v38 = vrot.slane %v296_v34, %v416_v28 }
 0x190   :  { %v424_v37 = vrot.slane %v299_v33, %v423_v22  ;;  %v412_v39 = vsel %vm411_vm13, %v410_v19, %v405_v36 }
 0x191   :  { %v419_v29 = vsel %vm418_vm14, %v417_v38, %v412_v39 }
 0x192   :  { %v426_v35 = vsel %vm425_vm15, %v424_v37, %v419_v29 }
 0x193   :  { %428 = vst [vmem:[#allocation2] sm:$0x1] %v426_v35 }
 0x194   :  { %536 = shalt.err (!%p533_p4)
}
 0x195   :  { %s537_s29 = scalar_lea.hbm %s762_s3, 16 }
 0x196   :  { %p538_p5 = scmp.ne.s32.totalorder %s762_s3, %s537_s29  ;;  %p541_p6 = scmp.lt.u32.totalorder %s537_s29, %s762_s3 }
 0x198   :  { %p543_p7 = pnand %p541_p6, %p538_p5 }
 0x19a   :  { %546 = shalt.err (!%p543_p7)
}
 0x19b   :  { %438 = dma.vmem_to_hbm [thread:$0]  %s436_s2, 16, %s762_s3, [#allocation3]  }
 0x19c   :  { %547 = dma.done.wait [#allocation3], 16  }
 0x19d   :  { %548 = vsyncadd [#allocation3], 4294967280 }
 0x19e   :  { %442 = vsyncpa [#allocation3], 1 }

// kernel: tpu_custom_call.1
= control target key start
LH: loop header
LB: loop body
LE: loop exit
PB: predicated region body
PF: predicated region fallthrough
CT: control target
= control target key end

     0   :  { %vm42_vm0 = vcmask 261120   ;;  %s759_s0 = inlined_call_operand.vmem [shape: f32[128,32], index: 0, kind: input, shape index: {}]   ;;  %s760_s1 = inlined_call_operand.vmem [shape: f32[32,32], index: 1, kind: input, shape index: {}]   ;;  %s761_s2 = inlined_call_operand.vmem [shape: f32[1,32], index: 2, kind: input, shape index: {}]   ;;  %s762_s3 = inlined_call_operand.hbm [shape: f32[1,128], index: 3, kind: output, shape index: {}]  }
   0x1   :  { %v31_v0 = vld [vmem:[%s760_s1] sm:$0xff]  ;;  %v32_v1 = vld [vmem:[%s760_s1 + $0x8] sm:$0xff]  ;;  %v33_v2 = vld [vmem:[%s760_s1 + $0x10] sm:$0xff] }
   0x2   :  { %v512_v3 = vpack.c.bf16 %v32_v1, %v31_v0  ;;  %v34_v4 = vld [vmem:[%s760_s1 + $0x18] sm:$0xff]  ;;  %v15_v5 = vld [vmem:[%s759_s0] sm:$0xff] }
   0x3   :  { %v588_v6 = vld [vmem:[%s759_s0 + $0x40] sm:$0xff]  ;;  %v516_v7 = vpack.c.bf16 %v34_v4, %v33_v2  ;;  %488 = vmatprep.mubr.msk.f32.mxu0 %vm42_vm0, %v15_v5 }
   0x4   :  { %500 = vmatprep.mubr.msk.f32.mxu1 %vm42_vm0, %v588_v6  ;;  %513 = vmatprep.subr.bf16.mxu0 %v512_v3 }
   0x5   :  { %520 = vmatprep.subr.bf16.mxu1 %v512_v3  ;;  %515 = vmatpush3.bf16.msra.mxu0 %v512_v3 }
   0x6   :  { %522 = vmatpush3.bf16.msra.mxu1 %v512_v3  ;;  %517 = vmatprep.subr.bf16.mxu0 %v516_v7 }
   0x7   :  { %521 = vmatprep.subr.bf16.mxu1 %v516_v7 }
   0x8   :  { %8 = vsyncpa [#allocation3], 0  ;;  %v16_v8 = vld [vmem:[%s759_s0 + $0x8] sm:$0xff]  ;;  %v602_v10 = vld [vmem:[%s759_s0 + $0x10] sm:$0xff]  ;;  %vm327_vm1 = vcmask 130112   ;;  %vm334_vm2 = vcmask 195712  }
   0x9   :  { %519 = vmatpush3.bf16.msra.mxu0 %v516_v7  ;;  %v24_v9 = vld [vmem:[%s759_s0 + $0x48] sm:$0xff]  ;;  %v607_v11 = vld [vmem:[%s759_s0 + $0x50] sm:$0xff]  ;;  %v18_v12 = vld [vmem:[%s759_s0 + $0x18] sm:$0xff]  ;;  %vm341_vm3 = vcmask 261312   ;;  %vm348_vm4 = vcmask 326912   ;;  %vm355_vm5 = vcmask 392512  }
   0xa   :  { %523 = vmatpush3.bf16.msra.mxu1 %v516_v7  ;;  %v26_v13 = vld [vmem:[%s759_s0 + $0x58] sm:$0xff]  ;;  %v624_v14 = vld [vmem:[%s759_s0 + $0x20] sm:$0xff]  ;;  %v20_v16 = vld [vmem:[%s759_s0 + $0x28] sm:$0xff]  ;;  %vm362_vm6 = vcmask 458112   ;;  %vm369_vm7 = vcmask 523712   ;;  %vm376_vm8 = vcmask 589312  }
   0xb   :  { %v629_v15 = vld [vmem:[%s759_s0 + $0x60] sm:$0xff]  ;;  %v643_v17 = vld [vmem:[%s759_s0 + $0x68] sm:$0xff]  ;;  %v648_v18 = vld [vmem:[%s759_s0 + $0x30] sm:$0xff]  ;;  %vm383_vm9 = vcmask 654912   ;;  %vm390_vm10 = vcmask 720512   ;;  %vm397_vm11 = vcmask 786112  }
   0xc   :  { %489 = vmatmul.mubr.msk.f32.vlgmr.msra.gmra.mrb[0].mxu0 %vm42_vm0, %v16_v8  ;;  %v653_v19 = vld [vmem:[%s759_s0 + $0x70] sm:$0xff]  ;;  %v663_v20 = vld [vmem:[%s759_s0 + $0x38] sm:$0xff]  ;;  %v679_v22 = vld [vmem:[%s761_s2] ss:$0 sm:$0xff]  ;;  %vm404_vm12 = vcmask 851712   ;;  %vm411_vm13 = vcmask 917312  }
   0xd   :  { %501 = vmatmul.mubr.msk.f32.vlgmr.msra.gmra.mrb[0].mxu1 %vm42_vm0, %v24_v9  ;;  %491 = vmatprep.mubr.msk.f32.mxu0 %vm42_vm0, %v602_v10  ;;  %v670_v21 = vld [vmem:[%s759_s0 + $0x78] sm:$0xff]  ;;  %vm418_vm14 = vcmask 982912   ;;  %s549_s0 = smov [#allocation2]   ;;  %vm425_vm15 = vcmask 1048512  }
   0xe   :  { %503 = vmatprep.mubr.msk.f32.mxu1 %vm42_vm0, %v607_v11  ;;  %s435_s2 = sshll.u32 %s549_s0, 4  ;;  %s436_s2 = int_to_ptr.vmem [resolvable:$true] %s435_s2 }
   0xf   :  { %s525_s25 = scalar_lea.vmem %s436_s2, 16  ;;  %s529_s26 = scalar_lea.vmem %s436_s2, 32 }
  0x10   :  { %492 = vmatmul.mubr.msk.f32.gmra.mrb[2].mxu0 %vm42_vm0, %v18_v12  ;;  %p526_p0 = scmp.ne.s32.totalorder %s436_s2, %s525_s25  ;;  %p530_p1 = scmp.lt.s32.totalorder %s436_s2, %s436_s2 }
  0x11   :  { %504 = vmatmul.mubr.msk.f32.gmra.mrb[2].mxu1 %vm42_vm0, %v26_v13  ;;  %494 = vmatprep.mubr.msk.f32.mxu0 %vm42_vm0, %v624_v14  ;;  %p531_p2 = scmp.lt.s32.totalorder %s529_s26, %s525_s25 }
  0x12   :  { %506 = vmatprep.mubr.msk.f32.mxu1 %vm42_vm0, %v629_v15 }
  0x13   :  { %p532_p3 = por %p531_p2, %p530_p1 }
  0x14   :  { %495 = vmatmul.mubr.msk.f32.gmra.mrb[4].mxu0 %vm42_vm0, %v20_v16 }
  0x15   :  { %507 = vmatmul.mubr.msk.f32.gmra.mrb[4].mxu1 %vm42_vm0, %v643_v17  ;;  %497 = vmatprep.mubr.msk.f32.mxu0 %vm42_vm0, %v648_v18  ;;  %p533_p4 = pnand %p532_p3, %p526_p0 }
  0x16   :  { %509 = vmatprep.mubr.msk.f32.mxu1 %vm42_vm0, %v653_v19 }
  0x18   :  { %498 = vmatmul.mubr.msk.f32.gmra.mrb[6].mxu0 %vm42_vm0, %v663_v20 }
  0x19   :  { %510 = vmatmul.mubr.msk.f32.gmra.mrb[6].mxu1 %vm42_vm0, %v670_v21 }
  0xdf   :  { %v490_v23 = vpop.f32.mrb[0].mxu0 }
  0xe0   :  { %v502_v24 = vpop.f32.mrb[0].mxu1  ;;  %v163_v25 = vadd.f32 %v490_v23, %v679_v22  ;;  %v157_v27 = vpop.f32.mrb[1].mxu0 }
  0xe1   :  { %v203_v26 = vadd.f32 %v502_v24, %v679_v22  ;;  %v197_v28 = vpop.f32.mrb[1].mxu1  ;;  %v158_v29 = vadd.f32 %v679_v22, %v157_v27 }
  0xe2   :  { %v237_v31 = vmul.f32 %v163_v25, %v16_v8  ;;  %v198_v32 = vadd.f32 %v679_v22, %v197_v28 }
  0xe3   :  { %v245_v30 = vmul.f32 %v203_v26, %v24_v9  ;;  %v493_v33 = vpop.f32.mrb[2].mxu0  ;;  %v236_v35 = vmul.f32 %v158_v29, %v15_v5  ;;  %v316_v26 = vlaneseq }
  0xe4   :  { %v505_v34 = vpop.f32.mrb[2].mxu1  ;;  %v173_v36 = vadd.f32 %v493_v33, %v679_v22  ;;  %v167_v37 = vpop.f32.mrb[3].mxu0  ;;  %v255_v39 = vsel %vm42_vm0, %v237_v31, 0.0  ;;  %v244_v45 = vmul.f32 %v198_v32, %v588_v6 }
  0xe5   :  { %v279_v38 = vsel %vm42_vm0, %v245_v30, 0.0  ;;  %v213_v40 = vadd.f32 %v505_v34, %v679_v22  ;;  %v207_v41 = vpop.f32.mrb[3].mxu1  ;;  %256 = vadd.xlane.f32.xlu0 %v255_v39  ;;  %v168_v47 = vadd.f32 %v679_v22, %v167_v37  ;;  %v252_v50 = vsel %vm42_vm0, %v236_v35, 0.0 }
  0xe6   :  { %280 = vadd.xlane.f32.xlu1 %v279_v38  ;;  %v239_v42 = vmul.f32 %v173_v36, %v18_v12  ;;  %v208_v48 = vadd.f32 %v679_v22, %v207_v41  ;;  %v276_v58 = vsel %vm42_vm0, %v244_v45, 0.0  ;;  %v725_v29 = vshrl.u32 %v316_v26, 7 }
  0xe7   :  { %v247_v43 = vmul.f32 %v213_v40, %v26_v13  ;;  %v496_v44 = vpop.f32.mrb[4].mxu0  ;;  %v238_v59 = vmul.f32 %v168_v47, %v602_v10 }
  0xe8   :  { %v508_v46 = vpop.f32.mrb[4].mxu1  ;;  %v261_v49 = vsel %vm42_vm0, %v239_v42, 0.0  ;;  %v177_v51 = vpop.f32.mrb[5].mxu0  ;;  %v183_v54 = vadd.f32 %v496_v44, %v679_v22  ;;  %v246_v60 = vmul.f32 %v208_v48, %v607_v11 }
  0xe9   :  { %v217_v52 = vpop.f32.mrb[5].mxu1  ;;  %253 = vadd.xlane.f32.xlu0 %v252_v50  ;;  %v285_v53 = vsel %vm42_vm0, %v247_v43, 0.0  ;;  %v178_v55 = vadd.f32 %v679_v22, %v177_v51  ;;  %v258_v3 = vsel %vm42_vm0, %v238_v59, 0.0  ;;  %v223_v5 = vadd.f32 %v508_v46, %v679_v22 }
  0xea   :  { %262 = vadd.xlane.f32.xlu1 %v261_v49  ;;  %v241_v1 = vmul.f32 %v183_v54, %v20_v16  ;;  %v282_v4 = vsel %vm42_vm0, %v246_v60, 0.0  ;;  %v218_v6 = vadd.f32 %v679_v22, %v217_v52 }
  0xeb   :  { %v499_v56 = vpop.f32.mrb[6].mxu0  ;;  %v240_v2 = vmul.f32 %v178_v55, %v624_v14  ;;  %v249_v11 = vmul.f32 %v223_v5, %v643_v17 }
  0xec   :  { %v511_v57 = vpop.f32.mrb[6].mxu1  ;;  %v187_v61 = vpop.f32.mrb[7].mxu0  ;;  %v193_v63 = vadd.f32 %v499_v56, %v679_v22  ;;  %v267_v7 = vsel %vm42_vm0, %v241_v1, 0.0  ;;  %v248_v12 = vmul.f32 %v218_v6, %v629_v15 }
  0xed   :  { %v227_v62 = vpop.f32.mrb[7].mxu1  ;;  %277 = vadd.xlane.f32.xlu0 %v276_v58  ;;  %v188_v0 = vadd.f32 %v679_v22, %v187_v61  ;;  %v264_v8 = vsel %vm42_vm0, %v240_v2, 0.0  ;;  %v233_v13 = vadd.f32 %v511_v57, %v679_v22 }
  0xee   :  { %286 = vadd.xlane.f32.xlu1 %v285_v53  ;;  %v243_v9 = vmul.f32 %v193_v63, %v663_v20  ;;  %v228_v23 = vadd.f32 %v679_v22, %v227_v62  ;;  %v291_v20 = vsel %vm42_vm0, %v249_v11, 0.0  ;;  %v317_v22 = vand.u32 127, %v316_v26 }
  0xef   :  { %v242_v10 = vmul.f32 %v188_v0, %v648_v18  ;;  %v288_v18 = vsel %vm42_vm0, %v248_v12, 0.0  ;;  %v251_v24 = vmul.f32 %v233_v13, %v670_v21 }
  0xf0   :  { %v273_v14 = vsel %vm42_vm0, %v243_v9, 0.0  ;;  %v250_v17 = vmul.f32 %v228_v23, %v653_v19  ;;  %v322_v30 = vadd.s32 4294967288, %v317_v22  ;;  %v329_v32 = vadd.s32 4294967280, %v317_v22 }
  0xf1   :  { %283 = vadd.xlane.f32.xlu0 %v282_v4  ;;  %v270_v16 = vsel %vm42_vm0, %v242_v10, 0.0  ;;  %v297_v15 = vsel %vm42_vm0, %v251_v24, 0.0  ;;  %v320_v19 = vsub.s32 %v317_v22, %v725_v29  ;;  %v336_v34 = vadd.s32 4294967272, %v317_v22 }
  0xf2   :  { %259 = vadd.xlane.f32.xlu1 %v258_v3  ;;  %v294_v25 = vsel %vm42_vm0, %v250_v17, 0.0  ;;  %v325_v33 = vsub.s32 %v322_v30, %v725_v29  ;;  %v332_v37 = vsub.s32 %v329_v32, %v725_v29  ;;  %v343_v38 = vadd.s32 4294967264, %v317_v22 }
  0xf3   :  { %v350_v40 = vadd.s32 4294967256, %v317_v22  ;;  %v339_v42 = vsub.s32 %v336_v34, %v725_v29  ;;  %v364_v47 = vadd.s32 4294967240, %v317_v22  ;;  %v357_v48 = vadd.s32 4294967248, %v317_v22 }
  0xf4   :  { %v346_v46 = vsub.s32 %v343_v38, %v725_v29  ;;  %v371_v51 = vadd.s32 4294967232, %v317_v22  ;;  %v378_v53 = vadd.s32 4294967224, %v317_v22  ;;  %v385_v55 = vadd.s32 4294967216, %v317_v22 }
  0xf5   :  { %265 = vadd.xlane.f32.xlu0 %v264_v8  ;;  %v353_v50 = vsub.s32 %v350_v40, %v725_v29  ;;  %v367_v59 = vsub.s32 %v364_v47, %v725_v29  ;;  %v360_v60 = vsub.s32 %v357_v48, %v725_v29  ;;  %v392_v61 = vadd.s32 4294967208, %v317_v22 }
  0xf6   :  { %268 = vadd.xlane.f32.xlu1 %v267_v7  ;;  %v406_v0 = vadd.s32 4294967192, %v317_v22  ;;  %v374_v1 = vsub.s32 %v371_v51, %v725_v29  ;;  %v399_v3 = vadd.s32 4294967200, %v317_v22  ;;  %v381_v4 = vsub.s32 %v378_v53, %v725_v29 }
  0xf7   :  { %v388_v5 = vsub.s32 %v385_v55, %v725_v29  ;;  %v420_v10 = vadd.s32 4294967176, %v317_v22  ;;  %v413_v11 = vadd.s32 4294967184, %v317_v22  ;;  %v395_v12 = vsub.s32 %v392_v61, %v725_v29 }
  0xf9   :  { %271 = vadd.xlane.f32.xlu0 %v270_v16  ;;  %v423_v22 = vsub.s32 %v420_v10, %v725_v29 }
  0xfa   :  { %274 = vadd.xlane.f32.xlu1 %v273_v14  ;;  %v409_v14 = vsub.s32 %v406_v0, %v725_v29 }
  0xfd   :  { %289 = vadd.xlane.f32.xlu0 %v288_v18 }
  0xfe   :  { %292 = vadd.xlane.f32.xlu1 %v291_v20  ;;  %v402_v20 = vsub.s32 %v399_v3, %v725_v29 }
 0x101   :  { %295 = vadd.xlane.f32.xlu0 %v294_v25 }
 0x102   :  { %298 = vadd.xlane.f32.xlu1 %v297_v15 }
 0x172   :  { %v257_v28 = vpop.xlane.xlu0 %256 }
 0x173   :  { %v723_v27 = vpop.xlane.xlu1 %280  ;;  %v326_v41 = vrot.slane %v257_v28, %v325_v33  ;;  %v416_v28 = vsub.s32 %v413_v11, %v725_v29 }
 0x174   :  { %v382_v18 = vrot.slane %v723_v27, %v381_v4 }
 0x176   :  { %v254_v21 = vpop.xlane.xlu0 %253 }
 0x177   :  { %v263_v31 = vpop.xlane.xlu1 %262  ;;  %v321_v39 = vrot.slane %v254_v21, %v320_v19 }
 0x178   :  { %v340_v54 = vrot.slane %v263_v31, %v339_v42 }
 0x179   :  { %v328_v49 = vsel %vm327_vm1, %v326_v41, %v321_v39 }
 0x17a   :  { %v278_v36 = vpop.xlane.xlu0 %277 }
 0x17b   :  { %v729_v35 = vpop.xlane.xlu1 %286  ;;  %v375_v16 = vrot.slane %v278_v36, %v374_v1 }
 0x17c   :  { %v396_v30 = vrot.slane %v729_v35, %v395_v12 }
 0x17e   :  { %v284_v44 = vpop.xlane.xlu0 %283 }
 0x17f   :  { %v260_v43 = vpop.xlane.xlu1 %259  ;;  %v389_v25 = vrot.slane %v284_v44, %v388_v5 }
 0x180   :  { %v333_v45 = vrot.slane %v260_v43, %v332_v37 }
 0x182   :  { %v335_v52 = vsel %vm334_vm2, %v333_v45, %v328_v49  ;;  %v266_v57 = vpop.xlane.xlu0 %265 }
 0x183   :  { %v269_v56 = vpop.xlane.xlu1 %268  ;;  %v347_v58 = vrot.slane %v266_v57, %v346_v46  ;;  %v342_v63 = vsel %vm341_vm3, %v340_v54, %v335_v52 }
 0x184   :  { %v354_v62 = vrot.slane %v269_v56, %v353_v50 }
 0x185   :  { %v349_v2 = vsel %vm348_vm4, %v347_v58, %v342_v63 }
 0x186   :  { %v272_v7 = vpop.xlane.xlu0 %271  ;;  %v356_v13 = vsel %vm355_vm5, %v354_v62, %v349_v2 }
 0x187   :  { %v275_v6 = vpop.xlane.xlu1 %274  ;;  %v361_v9 = vrot.slane %v272_v7, %v360_v60 }
 0x188   :  { %v368_v8 = vrot.slane %v275_v6, %v367_v59 }
 0x189   :  { %v363_v23 = vsel %vm362_vm6, %v361_v9, %v356_v13 }
 0x18a   :  { %v370_v24 = vsel %vm369_vm7, %v368_v8, %v363_v23  ;;  %v290_v15 = vpop.xlane.xlu0 %289 }
 0x18b   :  { %v293_v17 = vpop.xlane.xlu1 %292  ;;  %v377_v26 = vsel %vm376_vm8, %v375_v16, %v370_v24  ;;  %v403_v32 = vrot.slane %v290_v15, %v402_v20 }
 0x18c   :  { %v384_v31 = vsel %vm383_vm9, %v382_v18, %v377_v26  ;;  %v410_v19 = vrot.slane %v293_v17, %v409_v14 }
 0x18d   :  { %v391_v21 = vsel %vm390_vm10, %v389_v25, %v384_v31 }
 0x18e   :  { %v398_v27 = vsel %vm397_vm11, %v396_v30, %v391_v21  ;;  %v296_v34 = vpop.xlane.xlu0 %295 }
 0x18f   :  { %v299_v33 = vpop.xlane.xlu1 %298  ;;  %v405_v36 = vsel %vm404_vm12, %v403_v32, %v398_v27  ;;  %v417_v38 = vrot.slane %v296_v34, %v416_v28 }
 0x190   :  { %v424_v37 = vrot.slane %v299_v33, %v423_v22  ;;  %v412_v39 = vsel %vm411_vm13, %v410_v19, %v405_v36 }
 0x191   :  { %v419_v29 = vsel %vm418_vm14, %v417_v38, %v412_v39 }
 0x192   :  { %v426_v35 = vsel %vm425_vm15, %v424_v37, %v419_v29 }
 0x193   :  { %428 = vst [vmem:[#allocation2] sm:$0x1] %v426_v35 }
 0x194   :  { %536 = shalt.err (!%p533_p4)
}
 0x195   :  { %s537_s29 = scalar_lea.hbm %s762_s3, 16 }
 0x196   :  { %p538_p5 = scmp.ne.s32.totalorder %s762_s3, %s537_s29  ;;  %p541_p6 = scmp.lt.u32.totalorder %s537_s29, %s762_s3 }
 0x198   :  { %p543_p7 = pnand %p541_p6, %p538_p5 }
 0x19a   :  { %546 = shalt.err (!%p543_p7)
}
 0x19b   :  { %438 = dma.vmem_to_hbm [thread:$0]  %s436_s2, 16, %s762_s3, [#allocation3]  }
 0x19c   :  { %547 = dma.done.wait [#allocation3], 16  }
 0x19d   :  { %548 = vsyncadd [#allocation3], 4294967280 }
 0x19e   :  { %442 = vsyncpa [#allocation3], 1 }

</bundles_post_ra>
